<compile_context>
chip_gen: v5e
topology: v5e:2x2
jax: 0.10.0
libtpu: 0.0.40
codegen_flags: <defaults>
</compile_context>

<pallas_src>
import numpy as np
import jax
import jax.numpy as jnp
from jax.experimental import pallas as pl
from jax.experimental.pallas import tpu as pltpu

# WingLoss constants (module __init__ with w=10, e=2)
_W = 10.0
_E = 2.0
_C = _W - _W * float(np.log(1.0 + _W / _E))

_LANES = 128
_SUBLANES = 8               # f32 sublane tile; 16 for bf16 handled via `sub` below
_TARGET_BLOCK_ROWS = 4096   # 4096 x 128 f32 = 2 MiB/input tile; 8 MiB double-buffered
_SLICE_ROWS = 256           # strip-mine slice: 256 x 128 f32 = 32 vregs per operand


def _wing_elem(x, t):
    """Elementwise wing loss in f32 (fused select form; matches the module)."""
    x = x.astype(jnp.float32)
    t = t.astype(jnp.float32)
    abs_diff = jnp.where(t == -1.0, 0.0, jnp.abs(x - t))
    return jnp.where(
        abs_diff < _W,
        _W * jnp.log(1.0 + abs_diff * (1.0 / _E)),
        abs_diff - _C,
    )


def _strip_sum(x_ref, t_ref, nrows):
    """Sum wing loss over the first `nrows` (static, multiple of 8) rows of the
    current block, strip-mined into _SLICE_ROWS row slices so intermediates stay
    in vregs.  Returns a lane-dense (8, 128) f32 partial."""

    def slice_sum(r0, srows):
        x = x_ref[pl.ds(r0, srows), :]
        t = t_ref[pl.ds(r0, srows), :]
        y = _wing_elem(x, t)
        # per-sublane partial: free reshape (groups of (8,128) tiles), VPU adds
        return jnp.sum(y.reshape(srows // _SUBLANES, _SUBLANES, _LANES), axis=0)

    n_full = nrows // _SLICE_ROWS
    rem = nrows % _SLICE_ROWS

    if n_full == 1 and rem == 0:
        return slice_sum(0, _SLICE_ROWS)

    acc = jnp.zeros((_SUBLANES, _LANES), jnp.float32)
    if n_full > 0:
        def body(j, a):
            r0 = pl.multiple_of(j * _SLICE_ROWS, _SLICE_ROWS)
            return a + slice_sum(r0, _SLICE_ROWS)
        acc = jax.lax.fori_loop(0, n_full, body, acc, unroll=True)
    if rem > 0:
        acc = acc + slice_sum(n_full * _SLICE_ROWS, rem)
    return acc


def _make_kernel(block_rows, last_valid_rows, num_blocks):
    full = (last_valid_rows == block_rows)

    def kernel(x_ref, t_ref, o_ref):
        i = pl.program_id(0)

        @pl.when(i == 0)
        def _():
            o_ref[...] = jnp.zeros_like(o_ref)

        if full:
            o_ref[...] += _strip_sum(x_ref, t_ref, block_rows)
        else:
            # Only the final (partial) block pays for the shorter row count;
            # all other blocks run the unmasked full-block path.
            @pl.when(i < num_blocks - 1)
            def _():
                o_ref[...] += _strip_sum(x_ref, t_ref, block_rows)

            @pl.when(i == num_blocks - 1)
            def _():
                o_ref[...] += _strip_sum(x_ref, t_ref, last_valid_rows)

    return kernel


def wing_loss(x, t):
    """Pallas TPU implementation of WingLoss(w=10, e=2).forward(x, t)."""
    assert x.shape == t.shape
    if x.dtype != t.dtype:
        dt = jnp.promote_types(x.dtype, t.dtype)
        x = x.astype(dt)
        t = t.astype(dt)

    n = int(np.prod(x.shape)) if x.ndim > 0 else 1
    x_flat = x.reshape(-1)
    t_flat = t.reshape(-1)

    itemsize = np.dtype(x.dtype).itemsize
    sub = max(_SUBLANES, 32 // itemsize)        # 8 for f32, 16 for bf16/f16
    tile_elems = sub * _LANES
    n_main = (n // tile_elems) * tile_elems     # tile-aligned prefix for the kernel

    total = jnp.zeros((), jnp.float32)

    if n_main > 0:
        rows = n_main // _LANES                 # multiple of `sub`
        block_rows = min(_TARGET_BLOCK_ROWS, rows)  # multiple of `sub` or full dim
        blocks = pl.cdiv(rows, block_rows)
        last_valid = rows - (blocks - 1) * block_rows

        # Contiguous prefix slice + reshape: no copy, no padding.
        x2 = x_flat[:n_main].reshape(rows, _LANES)
        t2 = t_flat[:n_main].reshape(rows, _LANES)

        out = pl.pallas_call(
            _make_kernel(block_rows, last_valid, blocks),
            out_shape=jax.ShapeDtypeStruct((_SUBLANES, _LANES), jnp.float32),
            grid_spec=pltpu.PrefetchScalarGridSpec(
                num_scalar_prefetch=0,
                grid=(blocks,),
                in_specs=[
                    pl.BlockSpec((block_rows, _LANES), lambda i: (i, 0)),
                    pl.BlockSpec((block_rows, _LANES), lambda i: (i, 0)),
                ],
                out_specs=pl.BlockSpec((_SUBLANES, _LANES), lambda i: (0, 0)),
            ),
            compiler_params=pltpu.CompilerParams(
                dimension_semantics=("arbitrary",),
            ),
            cost_estimate=pl.CostEstimate(
                flops=8 * n_main,
                transcendentals=n_main,
                bytes_accessed=2 * itemsize * n_main + _SUBLANES * _LANES * 4,
            ),
        )(x2, t2)
        total = total + jnp.sum(out)

    if n_main < n:
        # Sub-tile tail (< sub*128 elements): cheap plain-JAX cleanup, no padding copy.
        total = total + jnp.sum(_wing_elem(x_flat[n_main:], t_flat[n_main:]))

    return total


def _wing_loss_ref(x, t):
    """Pure-JAX reference mirroring the PyTorch module exactly (in f32)."""
    x = x.astype(jnp.float32)
    t = t.astype(jnp.float32)
    weight = jnp.where(t == -1.0, 0.0, 1.0)
    diff = weight * (x - t)
    abs_diff = jnp.abs(diff)
    flag = (abs_diff < _W).astype(jnp.float32)
    y = flag * _W * jnp.log(1.0 + abs_diff / _E) + (1.0 - flag) * (abs_diff - _C)
    return jnp.sum(y)


if __name__ == "__main__":
    key = jax.random.PRNGKey(0)

    def make_inputs(k, shape, dtype=jnp.float32):
        kx, kt, km = jax.random.split(k, 3)
        x = (jax.random.normal(kx, shape, dtype=jnp.float32) * 5.0).astype(dtype)
        t = (jax.random.normal(kt, shape, dtype=jnp.float32) * 5.0).astype(dtype)
        # sprinkle "ignore" targets (t == -1), as the module special-cases them
        mask = jax.random.bernoulli(km, 0.2, shape)
        return x, jnp.where(mask, jnp.asarray(-1.0, dtype), t)

    cases = [
        ((2, 4, 16, 16), jnp.float32),    # primary: exact single-block path
        ((2, 3, 7, 11), jnp.float32),     # tiny ragged: plain-JAX tail path
        ((2, 4, 300, 301), jnp.float32),  # multi-block + partial last block + tail
        ((2, 4, 16, 16), jnp.bfloat16),   # native bf16 DMA path (upcast in-kernel)
    ]
    keys = jax.random.split(key, len(cases))
    for k, (shape, dtype) in zip(keys, cases):
        x, t = make_inputs(k, shape, dtype)
        out = wing_loss(x, t)
        jax.block_until_ready(out)
        ref = _wing_loss_ref(x, t)
        np.testing.assert_allclose(
            np.asarray(out), np.asarray(ref), rtol=1e-4, atol=1e-2
        )

    print("KERNEL_OK")
</pallas_src>

<mosaic_0001>
module attributes {stable_mosaic.version = 11 : i64} {
  func.func @kernel(%arg0: i32, %arg1: memref<16x128xf32, #tpu.memory_space<vmem>>, %arg2: memref<16x128xf32, #tpu.memory_space<vmem>>, %arg3: memref<8x128xf32, #tpu.memory_space<vmem>>) attributes {dimension_semantics = [#tpu.dimension_semantics<arbitrary>], iteration_bounds = array<i64: 1>, scalar_prefetch = 0 : i64, scratch_operands = 0 : i64, tpu.core_type = #tpu.core_type<tc>, window_params = [{transform_indices = @transform_0, window_bounds = array<i64: 16, 128>}, {transform_indices = @transform_1, window_bounds = array<i64: 16, 128>}, {pipeline_mode = #tpu.pipeline_mode<synchronous>, transform_indices = @transform_2, window_bounds = array<i64: 8, 128>}]} {
    %c0_i32 = arith.constant 0 : i32
    %0 = arith.cmpi eq, %arg0, %c0_i32 : i32
    %1 = arith.extui %0 : i1 to i32
    %c0_i32_0 = arith.constant 0 : i32
    %2 = arith.cmpi ne, %1, %c0_i32_0 : i32
    scf.if %2 {
      %cst_16 = arith.constant 0.000000e+00 : f32
      %30 = vector.broadcast %cst_16 : f32 to vector<8x128xf32>
      %c0_17 = arith.constant 0 : index
      %c0_18 = arith.constant 0 : index
      %31 = vector.load %arg3[%c0_17, %c0_18] : memref<8x128xf32, #tpu.memory_space<vmem>>, vector<8x128xf32>
      tpu.vector_store %arg3[%c0_17, %c0_18], %30 {strides = array<i32>} : memref<8x128xf32, #tpu.memory_space<vmem>>, vector<8x128xf32>,
    } else {
    }
    %c0 = arith.constant 0 : index
    %c0_1 = arith.constant 0 : index
    %3 = vector.load %arg3[%c0, %c0_1] : memref<8x128xf32, #tpu.memory_space<vmem>>, vector<8x128xf32>
    %cst = arith.constant 0.000000e+00 : f32
    %4 = vector.broadcast %cst : f32 to vector<8x128xf32>
    %c0_2 = arith.constant 0 : index
    %c0_3 = arith.constant 0 : index
    %5 = vector.load %arg1[%c0_2, %c0_3] : memref<16x128xf32, #tpu.memory_space<vmem>>, vector<16x128xf32>
    %c0_4 = arith.constant 0 : index
    %c0_5 = arith.constant 0 : index
    %6 = vector.load %arg2[%c0_4, %c0_5] : memref<16x128xf32, #tpu.memory_space<vmem>>, vector<16x128xf32>
    %cst_6 = arith.constant -1.000000e+00 : f32
    %7 = vector.broadcast %cst_6 : f32 to vector<16x128xf32>
    %8 = arith.cmpf oeq, %6, %7 : vector<16x128xf32>
    %9 = arith.subf %5, %6 : vector<16x128xf32>
    %10 = math.absf %9 : vector<16x128xf32>
    %cst_7 = arith.constant 0.000000e+00 : f32
    %11 = vector.broadcast %cst_7 : f32 to vector<16x128xf32>
    %12 = arith.select %8, %11, %10 : vector<16x128xi1>, vector<16x128xf32>
    %cst_8 = arith.constant 1.000000e+01 : f32
    %13 = vector.broadcast %cst_8 : f32 to vector<16x128xf32>
    %14 = arith.cmpf olt, %12, %13 : vector<16x128xf32>
    %cst_9 = arith.constant 5.000000e-01 : f32
    %15 = vector.broadcast %cst_9 : f32 to vector<16x128xf32>
    %16 = arith.mulf %12, %15 : vector<16x128xf32>
    %cst_10 = arith.constant 1.000000e+00 : f32
    %17 = vector.broadcast %cst_10 : f32 to vector<16x128xf32>
    %18 = arith.addf %17, %16 : vector<16x128xf32>
    %19 = math.log %18 : vector<16x128xf32>
    %cst_11 = arith.constant 1.000000e+01 : f32
    %20 = vector.broadcast %cst_11 : f32 to vector<16x128xf32>
    %21 = arith.mulf %20, %19 : vector<16x128xf32>
    %cst_12 = arith.constant -7.9175949 : f32
    %22 = vector.broadcast %cst_12 : f32 to vector<16x128xf32>
    %23 = arith.subf %12, %22 : vector<16x128xf32>
    %24 = arith.select %14, %21, %23 : vector<16x128xi1>, vector<16x128xf32>
    %25 = vector.shape_cast %24 : vector<16x128xf32> to vector<2x8x128xf32>
    %cst_13 = arith.constant dense<0.000000e+00> : vector<8x128xf32>
    %26 = vector.multi_reduction <add>, %25, %cst_13 [0] : vector<2x8x128xf32> to vector<8x128xf32>
    %27 = arith.addf %4, %26 : vector<8x128xf32>
    %28 = arith.addf %3, %27 : vector<8x128xf32>
    %c0_14 = arith.constant 0 : index
    %c0_15 = arith.constant 0 : index
    %29 = vector.load %arg3[%c0_14, %c0_15] : memref<8x128xf32, #tpu.memory_space<vmem>>, vector<8x128xf32>
    tpu.vector_store %arg3[%c0_14, %c0_15], %28 {strides = array<i32>} : memref<8x128xf32, #tpu.memory_space<vmem>>, vector<8x128xf32>,
    return
  }
  func.func @transform_0(%arg0: i32) -> (i32, i32) {
    %c0_i32 = arith.constant 0 : i32
    %c0_i32_0 = arith.constant 0 : i32
    return %arg0, %c0_i32 : i32, i32
  }
  func.func @transform_1(%arg0: i32) -> (i32, i32) {
    %c0_i32 = arith.constant 0 : i32
    %c0_i32_0 = arith.constant 0 : i32
    return %arg0, %c0_i32 : i32, i32
  }
  func.func @transform_2(%arg0: i32) -> (i32, i32) {
    %c0_i32 = arith.constant 0 : i32
    %c0_i32_0 = arith.constant 0 : i32
    %c0_i32_1 = arith.constant 0 : i32
    return %c0_i32, %c0_i32_0 : i32, i32
  }
}

</mosaic_0001>

<bundles_post_ra>
// kernel: tpu_custom_call.1
= control target key start
LH: loop header
LB: loop body
LE: loop exit
PB: predicated region body
PF: predicated region fallthrough
CT: control target
= control target key end

     0   :  { %7 = vsyncpa [#allocation3], 0  ;;  %s219_s0 = inlined_call_operand.hbm [shape: f32[16,128], index: 0, kind: input, shape index: {}]   ;;  %s220_s1 = inlined_call_operand.hbm [shape: f32[16,128], index: 1, kind: input, shape index: {}]   ;;  %s221_s2 = inlined_call_operand.hbm [shape: f32[8,128], index: 2, kind: output, shape index: {}]  }
   0x1   :  { %8 = vsyncpa [#allocation6], 0 }
   0x2   :  { %9 = vsyncpa [#allocation4], 0  ;;  %s14_s11 = sshll.u32 %s219_s0, 4  ;;  %s190_s12 = smov [#allocation2]   ;;  %s15_s11 = int_to_ptr.hbm [resolvable:$true] %s14_s11 }
   0x3   :  { %s16_s13 = sshll.u32 %s190_s12, 4  ;;  %s27_s16 = sshll.u32 %s220_s1, 4  ;;  %s17_s13 = int_to_ptr.vmem [resolvable:$true] %s16_s13  ;;  %s28_s16 = int_to_ptr.hbm [resolvable:$true] %s27_s16 }
   0x4   :  { %s191_s17 = smov 128   ;;  %s192_s18 = smov 8  }
   0x5   :  { %22 = dma.hbm_to_vmem [thread:$0]  %s15_s11, 256, %s17_s13, [#allocation3], %s191_s17, %s191_s17, %s192_s18  }
   0x6   :  { %s193_s19 = smov [#allocation5]  }
   0x7   :  { %s29_s20 = sshll.u32 %s193_s19, 4  ;;  %s30_s20 = int_to_ptr.vmem [resolvable:$true] %s29_s20 }
   0x8   :  { %35 = dma.hbm_to_vmem [thread:$0]  %s28_s16, 256, %s30_s20, [#allocation6], %s191_s17, %s191_s17, %s192_s18  }
   0x9   :  { %184 = dma.done.wait [#allocation3], 256  }
   0xa   :  { %185 = vsyncadd [#allocation3], 4294967040 }
   0xb   :  { %186 = dma.done.wait [#allocation6], 256  }
   0xc   :  { %187 = vsyncadd [#allocation6], 4294967040  ;;  %v50_v0 = vld [vmem:[#allocation2] sm:$0xff]  ;;  %v51_v1 = vld [vmem:[#allocation2 + $0x8] sm:$0xff]  ;;  %s194_s0 = smov [#allocation7]   ;;  %s89_s23 = sshll.u32 %s221_s2, 4  ;;  %s90_s23 = int_to_ptr.hbm [resolvable:$true] %s89_s23 }
   0xd   :  { %v52_v2 = vld [vmem:[#allocation5] sm:$0xff]  ;;  %v53_v3 = vld [vmem:[#allocation5 + $0x8] sm:$0xff]  ;;  %s87_s1 = sshll.u32 %s194_s0, 4  ;;  %s88_s1 = int_to_ptr.vmem [resolvable:$true] %s87_s1 }
   0xe   :  { %v56_v4 = vsub.f32 %v50_v0, %v52_v2  ;;  %vm54_vm0 = vcmp.eq.f32.partialorder %v52_v2, -1.0  ;;  %v57_v5 = vsub.f32 %v51_v1, %v53_v3  ;;  %vm55_vm1 = vcmp.eq.f32.partialorder %v53_v3, -1.0 }
  0x10   :  { %v58_v6 = vand.u32 2147483647, %v56_v4  ;;  %v59_v7 = vand.u32 2147483647, %v57_v5 }
  0x12   :  { %v60_v8 = vsel %vm54_vm0, 0.0, %v58_v6  ;;  %v61_v9 = vsel %vm55_vm1, 0.0, %v59_v7 }
  0x13   :  { %v64_v10 = vmul.f32 0.5, %v60_v8  ;;  %v65_v11 = vmul.f32 0.5, %v61_v9  ;;  %v100_v17 = vadd.f32 7.917595, %v60_v8  ;;  %vm62_vm2 = vcmp.lt.f32.partialorder %v60_v8, 10.0 }
  0x14   :  { %v101_v19 = vadd.f32 7.917595, %v61_v9  ;;  %vm63_vm3 = vcmp.lt.f32.partialorder %v61_v9, 10.0 }
  0x15   :  { %v66_v12 = vadd.f32 1.0, %v64_v10  ;;  %v67_v13 = vadd.f32 1.0, %v65_v11 }
  0x17   :  { %108 = vlog2.f32 %v66_v12 }
  0x18   :  { %110 = vlog2.f32 %v67_v13 }
  0x1d   :  { %v109_v14 = vpop.eup %108 }
  0x1e   :  { %v111_v15 = vpop.eup %110  ;;  %v69_v16 = vmul.f32 0.6931472, %v109_v14 }
  0x1f   :  { %v71_v18 = vmul.f32 0.6931472, %v111_v15 }
  0x20   :  { %v72_v20 = vmul.f32 10.0, %v69_v16 }
  0x21   :  { %v73_v21 = vmul.f32 10.0, %v71_v18 }
  0x22   :  { %v76_v22 = vsel %vm62_vm2, %v72_v20, %v100_v17 }
  0x23   :  { %v77_v23 = vsel %vm63_vm3, %v73_v21, %v101_v19 }
  0x24   :  { %v78_v24 = vadd.f32 %v77_v23, %v76_v22 }
  0x26   :  { %81 = vst [vmem:[#allocation7] sm:$0xff] %v78_v24 }
  0x27   :  { %92 = dma.vmem_to_hbm [thread:$0]  %s88_s1, 128, %s90_s23, [#allocation4]  }
  0x28   :  { %188 = dma.done.wait [#allocation4], 128  }
  0x29   :  { %189 = vsyncadd [#allocation4], 4294967168 }
  0x2a   :  { %97 = vsyncpa [#allocation3], 1 }
  0x2b   :  { %98 = vsyncpa [#allocation6], 1 }
  0x2c   :  { %99 = vsyncpa [#allocation4], 1 }

</bundles_post_ra>
